<compile_context>
chip_gen: v7x
topology: tpu7x:2x2x1
jax: 0.10.0
libtpu: 0.0.40
codegen_flags: <defaults>
</compile_context>

<pallas_src>
import functools
import math

import jax
import jax.numpy as jnp
from jax.experimental import pallas as pl
from jax.experimental.pallas import tpu as pltpu


def _round_up(v, m):
    return ((v + m - 1) // m) * m


def _dir_gcn_kernel(adj_ref, adjt_ref, x_ref, wcat_ref, bcat_ref, o_ref,
                    acc_s2d_ref, acc_d2s_ref, *, batch, din_p, dout_p):
    ki = pl.program_id(1)

    @pl.when(ki == 0)
    def _init():
        acc_s2d_ref[...] = jnp.zeros_like(acc_s2d_ref)
        acc_d2s_ref[...] = jnp.zeros_like(acc_d2s_ref)

    # Message passing: one (TM, TK) x (TK, B*Din_p) matmul per direction, batch folded
    # into the lane axis so the adjacency stream is amortized over the whole batch.
    xt = x_ref[...]
    acc_s2d_ref[...] += jnp.dot(adj_ref[...], xt, preferred_element_type=jnp.float32)
    acc_d2s_ref[...] += jnp.dot(adjt_ref[...], xt, preferred_element_type=jnp.float32)

    @pl.when(ki == pl.num_programs(1) - 1)
    def _finalize():
        wcat = wcat_ref[...]          # (2*Din_p, Dout_p); alpha pre-folded into weights
        bcat = bcat_ref[...]          # (1, Dout_p);       merged bias
        for b in range(batch):        # static unroll; all slices are 128-lane aligned
            h = jnp.concatenate(
                [acc_s2d_ref[:, b * din_p:(b + 1) * din_p],
                 acc_d2s_ref[:, b * din_p:(b + 1) * din_p]],
                axis=-1)              # (TM, 2*Din_p) -> single wide-K fused linear
            y = jnp.dot(h, wcat, preferred_element_type=jnp.float32) + bcat
            o_ref[:, b * dout_p:(b + 1) * dout_p] = y.astype(o_ref.dtype)


def dir_gcn_conv_pallas(x, adj_norm, adj_t_norm, w1, b1, w2, b2, alpha,
                        *, tm=256, tk=256, compute_dtype=None):
    """x: [B, N, D_in]; adj_norm/adj_t_norm: [N, N]; w*: [D_in, D_out]; b*: [D_out]."""
    B, N, D_in = x.shape
    D_out = w1.shape[1]

    din_p = _round_up(D_in, 128)
    dout_p = _round_up(D_out, 128)

    TM = min(tm, _round_up(N, 128))
    TK = min(tk, _round_up(N, 128))
    n_pad = _round_up(N, (TM * TK) // math.gcd(TM, TK))

    pad_n, pad_di, pad_do = n_pad - N, din_p - D_in, dout_p - D_out

    adj_p = jnp.pad(adj_norm, ((0, pad_n), (0, pad_n)))
    adjt_p = jnp.pad(adj_t_norm, ((0, pad_n), (0, pad_n)))

    # Fold batch into the lane axis: [B, N, D_in] -> [n_pad, B * din_p].
    x_p = jnp.pad(x, ((0, 0), (0, pad_n), (0, pad_di)))
    x_w = jnp.transpose(x_p, (1, 0, 2)).reshape(n_pad, B * din_p)

    # Fuse the two Linears: fold alpha into the weights, merge the biases (one-time prep).
    w1s = jnp.pad(w1.astype(jnp.float32) * alpha, ((0, pad_di), (0, pad_do)))
    w2s = jnp.pad(w2.astype(jnp.float32) * (1.0 - alpha), ((0, pad_di), (0, pad_do)))
    w_cat = jnp.concatenate([w1s, w2s], axis=0)                      # (2*din_p, dout_p)
    b_cat = jnp.pad(alpha * b1 + (1.0 - alpha) * b2,
                    (0, pad_do)).astype(jnp.float32).reshape(1, dout_p)

    if compute_dtype is not None:  # e.g. jnp.bfloat16 on v6e/v7x; accumulation stays f32
        adj_p = adj_p.astype(compute_dtype)
        adjt_p = adjt_p.astype(compute_dtype)
        x_w = x_w.astype(compute_dtype)

    grid = (n_pad // TM, n_pad // TK)

    in_itemsize = jnp.dtype(adj_p.dtype).itemsize
    flops = (2 * 2 * n_pad * n_pad * B * din_p            # adj @ X and adj_t @ X
             + 2 * n_pad * (2 * din_p) * dout_p * B)      # fused linear
    bytes_accessed = (2 * n_pad * n_pad * in_itemsize
                      + n_pad * B * din_p * in_itemsize
                      + n_pad * B * dout_p * jnp.dtype(x.dtype).itemsize
                      + (2 * din_p * dout_p + dout_p) * 4)

    kernel = functools.partial(_dir_gcn_kernel, batch=B, din_p=din_p, dout_p=dout_p)

    out_w = pl.pallas_call(
        kernel,
        out_shape=jax.ShapeDtypeStruct((n_pad, B * dout_p), x.dtype),
        grid_spec=pltpu.PrefetchScalarGridSpec(
            num_scalar_prefetch=0,
            grid=grid,
            in_specs=[
                pl.BlockSpec((TM, TK), lambda mi, ki: (mi, ki)),           # adj_norm tile
                pl.BlockSpec((TM, TK), lambda mi, ki: (mi, ki)),           # adj_t_norm tile
                pl.BlockSpec((TK, B * din_p), lambda mi, ki: (ki, 0)),     # batch-folded x
                pl.BlockSpec((2 * din_p, dout_p), lambda mi, ki: (0, 0)),  # fused weights
                pl.BlockSpec((1, dout_p), lambda mi, ki: (0, 0)),          # fused bias
            ],
            out_specs=pl.BlockSpec((TM, B * dout_p), lambda mi, ki: (mi, 0)),
            scratch_shapes=[
                pltpu.VMEM((TM, B * din_p), jnp.float32),   # acc for adj_norm @ X
                pltpu.VMEM((TM, B * din_p), jnp.float32),   # acc for adj_t_norm @ X
            ],
        ),
        compiler_params=pltpu.CompilerParams(
            dimension_semantics=("parallel", "arbitrary"),
            vmem_limit_bytes=48 * 1024 * 1024,
        ),
        cost_estimate=pl.CostEstimate(
            flops=flops, transcendentals=0, bytes_accessed=bytes_accessed),
    )(adj_p, adjt_p, x_w, w_cat, b_cat)

    out = out_w.reshape(n_pad, B, dout_p).transpose(1, 0, 2)
    return out[:, :N, :D_out]


def directed_norm_dense(adj):
    """D_out^{-1/2} A D_in^{-1/2} with inf -> 0 masking (plain-JAX setup, matches torch)."""
    in_deg = adj.sum(axis=0)    # column sums
    out_deg = adj.sum(axis=1)   # row sums
    in_inv_sqrt = jnp.where(in_deg > 0, in_deg ** -0.5, 0.0)
    out_inv_sqrt = jnp.where(out_deg > 0, out_deg ** -0.5, 0.0)
    return out_inv_sqrt[:, None] * adj * in_inv_sqrt[None, :]


def build_dense_adjs(edge_index, num_nodes):
    # TODO(synk): true sparse SparseTensor/sparsesum path has no Pallas equivalent here;
    # the cached normalized adjacency is built densely (one-time setup, outside the kernel).
    row, col = edge_index
    adj = jnp.zeros((num_nodes, num_nodes), jnp.float32).at[row, col].set(1.0)
    adj_t = jnp.zeros((num_nodes, num_nodes), jnp.float32).at[col, row].set(1.0)
    return directed_norm_dense(adj), directed_norm_dense(adj_t)


def dir_gcn_conv_reference(x, adj_norm, adj_t_norm, w1, b1, w2, b2, alpha):
    h1 = jnp.einsum('ij,bjd->bid', adj_norm, x)
    h2 = jnp.einsum('ij,bjd->bid', adj_t_norm, x)
    return alpha * (h1 @ w1 + b1) + (1.0 - alpha) * (h2 @ w2 + b2)


if __name__ == "__main__":
    B, N, D_in, D_out = 2, 16, 8, 32
    alpha = 0.7
    num_edges = 40

    key = jax.random.PRNGKey(0)
    k_x, k_row, k_col, k_w1, k_b1, k_w2, k_b2 = jax.random.split(key, 7)

    # inputs
    x = jax.random.normal(k_x, (B, N, D_in), jnp.float32)
    row = jax.random.randint(k_row, (num_edges,), 0, N)
    col = jax.random.randint(k_col, (num_edges,), 0, N)
    edge_index = jnp.stack([row, col])

    # deterministic Linear params (PyTorch Linear-style uniform init), pre-transposed
    # to [D_in, D_out]
    bound = 1.0 / (D_in ** 0.5)
    w1 = jax.random.uniform(k_w1, (D_in, D_out), jnp.float32, -bound, bound)
    b1 = jax.random.uniform(k_b1, (D_out,), jnp.float32, -bound, bound)
    w2 = jax.random.uniform(k_w2, (D_in, D_out), jnp.float32, -bound, bound)
    b2 = jax.random.uniform(k_b2, (D_out,), jnp.float32, -bound, bound)

    # one-time normalized adjacency setup (the cached self.adj_norm / self.adj_t_norm)
    adj_norm, adj_t_norm = build_dense_adjs(edge_index, N)

    out = dir_gcn_conv_pallas(x, adj_norm, adj_t_norm, w1, b1, w2, b2, alpha)
    out = jax.block_until_ready(out)

    ref = dir_gcn_conv_reference(x, adj_norm, adj_t_norm, w1, b1, w2, b2, alpha)
    assert out.shape == (B, N, D_out)
    assert jnp.allclose(out, ref, atol=1e-5, rtol=1e-5)

    print("KERNEL_OK")
</pallas_src>

<mosaic_0001>
module attributes {stable_mosaic.version = 11 : i64} {
  func.func @_dir_gcn_kernel(%arg0: i32, %arg1: i32, %arg2: memref<128x128xf32, #tpu.memory_space<vmem>>, %arg3: memref<128x128xf32, #tpu.memory_space<vmem>>, %arg4: memref<128x256xf32, #tpu.memory_space<vmem>>, %arg5: memref<256x128xf32, #tpu.memory_space<vmem>>, %arg6: memref<1x128xf32, #tpu.memory_space<vmem>>, %arg7: memref<128x256xf32, #tpu.memory_space<vmem>>, %arg8: memref<128x256xf32, #tpu.memory_space<vmem>>, %arg9: memref<128x256xf32, #tpu.memory_space<vmem>>) attributes {dimension_semantics = [#tpu.dimension_semantics<parallel>, #tpu.dimension_semantics<arbitrary>], iteration_bounds = array<i64: 1, 1>, scalar_prefetch = 0 : i64, scratch_operands = 2 : i64, tpu.core_type = #tpu.core_type<tc>, window_params = [{transform_indices = @transform_0, window_bounds = array<i64: 128, 128>}, {transform_indices = @transform_1, window_bounds = array<i64: 128, 128>}, {transform_indices = @transform_2, window_bounds = array<i64: 128, 256>}, {pipeline_mode = #tpu.pipeline_mode<synchronous>, transform_indices = @transform_3, window_bounds = array<i64: 256, 128>}, {pipeline_mode = #tpu.pipeline_mode<synchronous>, transform_indices = @transform_4, window_bounds = array<i64: 1, 128>}, {transform_indices = @transform_5, window_bounds = array<i64: 128, 256>}]} {
    %c0_i32 = arith.constant 0 : i32
    %0 = arith.cmpi eq, %arg1, %c0_i32 : i32
    %1 = arith.extui %0 : i1 to i32
    %c0_i32_0 = arith.constant 0 : i32
    %2 = arith.cmpi ne, %1, %c0_i32_0 : i32
    scf.if %2 {
      %cst_17 = arith.constant 0.000000e+00 : f32
      %17 = vector.broadcast %cst_17 : f32 to vector<128x256xf32>
      %c0_18 = arith.constant 0 : index
      %c0_19 = arith.constant 0 : index
      %18 = vector.load %arg8[%c0_18, %c0_19] : memref<128x256xf32, #tpu.memory_space<vmem>>, vector<128x256xf32>
      tpu.vector_store %arg8[%c0_18, %c0_19], %17 {strides = array<i32>} : memref<128x256xf32, #tpu.memory_space<vmem>>, vector<128x256xf32>,
      %cst_20 = arith.constant 0.000000e+00 : f32
      %19 = vector.broadcast %cst_20 : f32 to vector<128x256xf32>
      %c0_21 = arith.constant 0 : index
      %c0_22 = arith.constant 0 : index
      %20 = vector.load %arg9[%c0_21, %c0_22] : memref<128x256xf32, #tpu.memory_space<vmem>>, vector<128x256xf32>
      tpu.vector_store %arg9[%c0_21, %c0_22], %19 {strides = array<i32>} : memref<128x256xf32, #tpu.memory_space<vmem>>, vector<128x256xf32>,
    } else {
    }
    %c0 = arith.constant 0 : index
    %c0_1 = arith.constant 0 : index
    %3 = vector.load %arg4[%c0, %c0_1] : memref<128x256xf32, #tpu.memory_space<vmem>>, vector<128x256xf32>
    %c0_2 = arith.constant 0 : index
    %c0_3 = arith.constant 0 : index
    %4 = vector.load %arg8[%c0_2, %c0_3] : memref<128x256xf32, #tpu.memory_space<vmem>>, vector<128x256xf32>
    %c0_4 = arith.constant 0 : index
    %c0_5 = arith.constant 0 : index
    %5 = vector.load %arg2[%c0_4, %c0_5] : memref<128x128xf32, #tpu.memory_space<vmem>>, vector<128x128xf32>
    %cst = arith.constant dense<0.000000e+00> : vector<128x256xf32>
    %6 = tpu.matmul %5, %3, %cst {dimension_numbers = #tpu.dot_dimension_numbers<[1], [0], [0], [1], [0, 0, 1, 1], [], []>} : vector<128x128xf32>, vector<128x256xf32>, vector<128x256xf32> -> vector<128x256xf32>
    %7 = arith.addf %4, %6 : vector<128x256xf32>
    %c0_6 = arith.constant 0 : index
    %c0_7 = arith.constant 0 : index
    %8 = vector.load %arg8[%c0_6, %c0_7] : memref<128x256xf32, #tpu.memory_space<vmem>>, vector<128x256xf32>
    tpu.vector_store %arg8[%c0_6, %c0_7], %7 {strides = array<i32>} : memref<128x256xf32, #tpu.memory_space<vmem>>, vector<128x256xf32>,
    %c0_8 = arith.constant 0 : index
    %c0_9 = arith.constant 0 : index
    %9 = vector.load %arg9[%c0_8, %c0_9] : memref<128x256xf32, #tpu.memory_space<vmem>>, vector<128x256xf32>
    %c0_10 = arith.constant 0 : index
    %c0_11 = arith.constant 0 : index
    %10 = vector.load %arg3[%c0_10, %c0_11] : memref<128x128xf32, #tpu.memory_space<vmem>>, vector<128x128xf32>
    %cst_12 = arith.constant dense<0.000000e+00> : vector<128x256xf32>
    %11 = tpu.matmul %10, %3, %cst_12 {dimension_numbers = #tpu.dot_dimension_numbers<[1], [0], [0], [1], [0, 0, 1, 1], [], []>} : vector<128x128xf32>, vector<128x256xf32>, vector<128x256xf32> -> vector<128x256xf32>
    %12 = arith.addf %9, %11 : vector<128x256xf32>
    %c0_13 = arith.constant 0 : index
    %c0_14 = arith.constant 0 : index
    %13 = vector.load %arg9[%c0_13, %c0_14] : memref<128x256xf32, #tpu.memory_space<vmem>>, vector<128x256xf32>
    tpu.vector_store %arg9[%c0_13, %c0_14], %12 {strides = array<i32>} : memref<128x256xf32, #tpu.memory_space<vmem>>, vector<128x256xf32>,
    %c0_i32_15 = arith.constant 0 : i32
    %14 = arith.cmpi eq, %arg1, %c0_i32_15 : i32
    %15 = arith.extui %14 : i1 to i32
    %c0_i32_16 = arith.constant 0 : i32
    %16 = arith.cmpi ne, %15, %c0_i32_16 : i32
    scf.if %16 {
      %c0_17 = arith.constant 0 : index
      %c0_18 = arith.constant 0 : index
      %17 = vector.load %arg5[%c0_17, %c0_18] : memref<256x128xf32, #tpu.memory_space<vmem>>, vector<256x128xf32>
      %c0_19 = arith.constant 0 : index
      %c0_20 = arith.constant 0 : index
      %18 = vector.load %arg6[%c0_19, %c0_20] : memref<1x128xf32, #tpu.memory_space<vmem>>, vector<1x128xf32>
      %c0_21 = arith.constant 0 : index
      %c0_22 = arith.constant 0 : index
      %19 = vector.load %arg8[%c0_21, %c0_22] : memref<128x256xf32, #tpu.memory_space<vmem>>, vector<128x128xf32>
      %c0_23 = arith.constant 0 : index
      %c0_24 = arith.constant 0 : index
      %20 = vector.load %arg9[%c0_23, %c0_24] : memref<128x256xf32, #tpu.memory_space<vmem>>, vector<128x128xf32>
      %21 = tpu.concatenate %19, %20 in 1 : vector<128x128xf32>, vector<128x128xf32> -> vector<128x256xf32>
      %cst_25 = arith.constant dense<0.000000e+00> : vector<128x128xf32>
      %22 = tpu.matmul %21, %17, %cst_25 {dimension_numbers = #tpu.dot_dimension_numbers<[1], [0], [0], [1], [0, 0, 1, 1], [], []>} : vector<128x256xf32>, vector<256x128xf32>, vector<128x128xf32> -> vector<128x128xf32>
      %23 = vector.broadcast %18 : vector<1x128xf32> to vector<128x128xf32>
      %24 = arith.addf %22, %23 : vector<128x128xf32>
      %c0_26 = arith.constant 0 : index
      %c0_27 = arith.constant 0 : index
      %25 = vector.load %arg7[%c0_26, %c0_27] : memref<128x256xf32, #tpu.memory_space<vmem>>, vector<128x128xf32>
      tpu.vector_store %arg7[%c0_26, %c0_27], %24 {strides = array<i32>} : memref<128x256xf32, #tpu.memory_space<vmem>>, vector<128x128xf32>,
      %c0_28 = arith.constant 0 : index
      %c128 = arith.constant 128 : index
      %26 = vector.load %arg8[%c0_28, %c128] : memref<128x256xf32, #tpu.memory_space<vmem>>, vector<128x128xf32>
      %c0_29 = arith.constant 0 : index
      %c128_30 = arith.constant 128 : index
      %27 = vector.load %arg9[%c0_29, %c128_30] : memref<128x256xf32, #tpu.memory_space<vmem>>, vector<128x128xf32>
      %28 = tpu.concatenate %26, %27 in 1 : vector<128x128xf32>, vector<128x128xf32> -> vector<128x256xf32>
      %cst_31 = arith.constant dense<0.000000e+00> : vector<128x128xf32>
      %29 = tpu.matmul %28, %17, %cst_31 {dimension_numbers = #tpu.dot_dimension_numbers<[1], [0], [0], [1], [0, 0, 1, 1], [], []>} : vector<128x256xf32>, vector<256x128xf32>, vector<128x128xf32> -> vector<128x128xf32>
      %30 = vector.broadcast %18 : vector<1x128xf32> to vector<128x128xf32>
      %31 = arith.addf %29, %30 : vector<128x128xf32>
      %c0_32 = arith.constant 0 : index
      %c128_33 = arith.constant 128 : index
      %32 = vector.load %arg7[%c0_32, %c128_33] : memref<128x256xf32, #tpu.memory_space<vmem>>, vector<128x128xf32>
      tpu.vector_store %arg7[%c0_32, %c128_33], %31 {strides = array<i32>} : memref<128x256xf32, #tpu.memory_space<vmem>>, vector<128x128xf32>,
    } else {
    }
    return
  }
  func.func @transform_0(%arg0: i32, %arg1: i32) -> (i32, i32) {
    %c0_i32 = arith.constant 0 : i32
    return %arg0, %arg1 : i32, i32
  }
  func.func @transform_1(%arg0: i32, %arg1: i32) -> (i32, i32) {
    %c0_i32 = arith.constant 0 : i32
    return %arg0, %arg1 : i32, i32
  }
  func.func @transform_2(%arg0: i32, %arg1: i32) -> (i32, i32) {
    %c0_i32 = arith.constant 0 : i32
    %c0_i32_0 = arith.constant 0 : i32
    return %arg1, %c0_i32 : i32, i32
  }
  func.func @transform_3(%arg0: i32, %arg1: i32) -> (i32, i32) {
    %c0_i32 = arith.constant 0 : i32
    %c0_i32_0 = arith.constant 0 : i32
    %c0_i32_1 = arith.constant 0 : i32
    return %c0_i32, %c0_i32_0 : i32, i32
  }
  func.func @transform_4(%arg0: i32, %arg1: i32) -> (i32, i32) {
    %c0_i32 = arith.constant 0 : i32
    %c0_i32_0 = arith.constant 0 : i32
    %c0_i32_1 = arith.constant 0 : i32
    return %c0_i32, %c0_i32_0 : i32, i32
  }
  func.func @transform_5(%arg0: i32, %arg1: i32) -> (i32, i32) {
    %c0_i32 = arith.constant 0 : i32
    %c0_i32_0 = arith.constant 0 : i32
    return %arg0, %c0_i32 : i32, i32
  }
}

</mosaic_0001>

<bundles_post_ra>
// kernel: tpu_custom_call.1
= control target key start
LH: loop header
LB: loop body
LE: loop exit
PB: predicated region body
PF: predicated region fallthrough
CT: control target
= control target key end

     0   :  { %10 = vsyncpa [#allocation5], 0  ;;  %s1777_s0 = inlined_call_operand.hbm [shape: f32[128,128], index: 0, kind: input, shape index: {}]   ;;  %s1778_s1 = inlined_call_operand.hbm [shape: f32[128,128], index: 1, kind: input, shape index: {}]   ;;  %s1779_s2 = inlined_call_operand.hbm [shape: f32[128,256], index: 2, kind: input, shape index: {}]   ;;  %s1780_s3 = inlined_call_operand.hbm [shape: f32[256,128], index: 3, kind: input, shape index: {}]   ;;  %s1781_s4 = inlined_call_operand.vmem [shape: f32[1,128], index: 4, kind: input, shape index: {}]   ;;  %s1782_s5 = inlined_call_operand.hbm [shape: f32[128,256], index: 5, kind: output, shape index: {}]  }
   0x1   :  { %11 = vsyncpa [#allocation8], 0 }
   0x2   :  { %12 = vsyncpa [#allocation11], 0 }
   0x3   :  { %13 = vsyncpa [#allocation6], 0  ;;  %s1586_s18 = smov [#allocation7]   ;;  %s1587_s20 = smov [#allocation4]  }
   0x4   :  { %s31_s19 = sshll.u32 %s1586_s18, 4  ;;  %s19_s21 = sshll.u32 %s1587_s20, 4  ;;  %s32_s19 = int_to_ptr.vmem [resolvable:$true] %s31_s19  ;;  %s1626_s21 = int_to_ptr.vmem [resolvable:$true] %s19_s21 }
   0x5   :  { %s1468_s24 = scalar_lea.hbm %s1778_s1, 2048 }
   0x6   :  { %p1469_p0 = scmp.ne.s32.totalorder %s1778_s1, %s1468_s24  ;;  %p1472_p1 = scmp.lt.u32.totalorder %s1468_s24, %s1778_s1 }
   0x8   :  { %p1474_p2 = pnand %p1472_p1, %p1469_p0 }
   0xa   :  { %1477 = shalt.err (!%p1474_p2)
}
   0xb   :  { %s1478_s29 = scalar_lea.vmem %s32_s19, 2048  ;;  %p1483_p4 = scmp.lt.s32.totalorder %s32_s19, %s32_s19 }
   0xc   :  { %p1479_p3 = scmp.ne.s32.totalorder %s32_s19, %s1478_s29  ;;  %p1484_p5 = scmp.lt.s32.totalorder %s1478_s29, %s1478_s29 }
   0xe   :  { %p1485_p6 = por %p1484_p5, %p1483_p4 }
  0x10   :  { %p1486_p7 = pnand %p1485_p6, %p1479_p3 }
  0x12   :  { %1489 = shalt.err (!%p1486_p7)
}
  0x13   :  { %s1588_s30 = smov 128   ;;  %s1589_s6 = smov 8  }
  0x14   :  { %37 = dma.hbm_to_vmem [thread:$0]  %s1778_s1, 2048, %s32_s19, [#allocation8], %s1588_s30, %s1588_s30, %s1589_s6  }
  0x15   :  { %s1490_s11 = scalar_lea.hbm %s1777_s0, 2048 }
  0x16   :  { %p1491_p8 = scmp.ne.s32.totalorder %s1777_s0, %s1490_s11  ;;  %p1494_p9 = scmp.lt.u32.totalorder %s1490_s11, %s1777_s0 }
  0x18   :  { %p1496_p10 = pnand %p1494_p9, %p1491_p8 }
  0x1a   :  { %1499 = shalt.err (!%p1496_p10)
}
  0x1b   :  { %s1500_s16 = scalar_lea.vmem %s1626_s21, 2048  ;;  %p1505_p12 = scmp.lt.s32.totalorder %s1626_s21, %s1626_s21 }
  0x1c   :  { %p1501_p11 = scmp.ne.s32.totalorder %s1626_s21, %s1500_s16  ;;  %p1506_p13 = scmp.lt.s32.totalorder %s1500_s16, %s1500_s16 }
  0x1e   :  { %p1507_p0 = por %p1506_p13, %p1505_p12 }
  0x20   :  { %p1508_p1 = pnand %p1507_p0, %p1501_p11 }
  0x22   :  { %1511 = shalt.err (!%p1508_p1)
}
  0x23   :  { %25 = dma.hbm_to_vmem [thread:$0]  %s1777_s0, 2048, %s1626_s21, [#allocation5], %s1588_s30, %s1588_s30, %s1589_s6  }
  0x24   :  { %s1590_s18 = smov [#allocation9]   ;;  %s1512_s23 = scalar_lea.hbm %s1779_s2, 4096 }
  0x25   :  { %s43_s19 = sshll.u32 %s1590_s18, 4  ;;  %p1513_p2 = scmp.ne.s32.totalorder %s1779_s2, %s1512_s23  ;;  %s44_s19 = int_to_ptr.vmem [resolvable:$true] %s43_s19 }
  0x26   :  { %p1516_p3 = scmp.lt.u32.totalorder %s1512_s23, %s1779_s2 }
  0x28   :  { %p1518_p4 = pnand %p1516_p3, %p1513_p2 }
  0x2a   :  { %1521 = shalt.err (!%p1518_p4)
}
  0x2b   :  { %s1522_s28 = scalar_lea.vmem %s44_s19, 4096  ;;  %p1527_p6 = scmp.lt.s32.totalorder %s44_s19, %s44_s19 }
  0x2c   :  { %p1523_p5 = scmp.ne.s32.totalorder %s44_s19, %s1522_s28  ;;  %p1528_p7 = scmp.lt.s32.totalorder %s1522_s28, %s1522_s28 }
  0x2e   :  { %p1529_p8 = por %p1528_p7, %p1527_p6 }
  0x30   :  { %p1530_p9 = pnand %p1529_p8, %p1523_p5 }
  0x32   :  { %1533 = shalt.err (!%p1530_p9)
}
  0x33   :  { %s1591_s0 = smov 256   ;;  %s1592_s21 = smov 16  }
  0x34   :  { %49 = dma.hbm_to_vmem [thread:$0]  %s1779_s2, 4096, %s44_s19, [#allocation8], %s1591_s0, %s1591_s0, %s1592_s21  }
  0x35   :  { %s1593_s8 = smov [#allocation10]   ;;  %s1534_s12 = scalar_lea.hbm %s1780_s3, 4096 }
  0x36   :  { %s55_s9 = sshll.u32 %s1593_s8, 4  ;;  %p1535_p10 = scmp.ne.s32.totalorder %s1780_s3, %s1534_s12  ;;  %s56_s9 = int_to_ptr.vmem [resolvable:$true] %s55_s9 }
  0x37   :  { %p1538_p11 = scmp.lt.u32.totalorder %s1534_s12, %s1780_s3 }
  0x39   :  { %p1540_p12 = pnand %p1538_p11, %p1535_p10 }
  0x3b   :  { %1543 = shalt.err (!%p1540_p12)
}
  0x3c   :  { %s1544_s1 = scalar_lea.vmem %s56_s9, 4096  ;;  %p1549_p0 = scmp.lt.s32.totalorder %s56_s9, %s56_s9 }
  0x3d   :  { %p1545_p13 = scmp.ne.s32.totalorder %s56_s9, %s1544_s1  ;;  %p1550_p1 = scmp.lt.s32.totalorder %s1544_s1, %s1544_s1 }
  0x3f   :  { %p1551_p2 = por %p1550_p1, %p1549_p0 }
  0x41   :  { %p1552_p3 = pnand %p1551_p2, %p1545_p13 }
  0x43   :  { %1555 = shalt.err (!%p1552_p3)
}
  0x44   :  { %61 = dma.hbm_to_vmem [thread:$0]  %s1780_s3, 4096, %s56_s9, [#allocation11], %s1588_s30, %s1588_s30, %s1589_s6  }
  0x45   :  { %1578 = dma.done.wait [#allocation5], 2048  }
  0x46   :  { %1579 = vsyncadd [#allocation5], 4294965248 }
  0x47   :  { %1580 = dma.done.wait [#allocation8], 6144  }
  0x48   :  { %1581 = vsyncadd [#allocation8], 4294961152 }
  0x49   :  { %1582 = dma.done.wait [#allocation11], 4096  }
  0x4a   :  { %1583 = vsyncadd [#allocation11], 4294963200  ;;  %v1594_v0 = vmov 0.0   ;;  %v145_v1 = vld [vmem:[#allocation9 + $0x8] sm:$0xff]  ;;  %v147_v2 = vld [vmem:[#allocation9 + $0x18] sm:$0xff] }
  0x4b   :  { %288 = vmatprep.mubr.f32.mxu0 %v1594_v0  ;;  %561 = vmatprep.mubr.f32.mxu1 %v1594_v0  ;;  %v144_v3 = vld [vmem:[#allocation9] sm:$0xff]  ;;  %v1330_v4 = vpack.c.bf16 %v147_v2, %v145_v1  ;;  %v146_v5 = vld [vmem:[#allocation9 + $0x10] sm:$0xff]  ;;  %v149_v6 = vld [vmem:[#allocation9 + $0x28] sm:$0xff] }
  0x4c   :  { %v151_v7 = vld [vmem:[#allocation9 + $0x38] sm:$0xff]  ;;  %v1332_v8 = vpack.c.bf16 %v146_v5, %v144_v3  ;;  %v148_v10 = vld [vmem:[#allocation9 + $0x20] sm:$0xff]  ;;  %v150_v11 = vld [vmem:[#allocation9 + $0x30] sm:$0xff] }
  0x4d   :  { %v1334_v9 = vpack.c.bf16 %v151_v7, %v149_v6  ;;  %v153_v12 = vld [vmem:[#allocation9 + $0x48] sm:$0xff]  ;;  %1331 = vmatprep.subr.bf16.mxu0 %v1330_v4  ;;  %1363 = vmatprep.subr.bf16.mxu1 %v1330_v4  ;;  %v155_v13 = vld [vmem:[#allocation9 + $0x58] sm:$0xff]  ;;  %v1336_v14 = vpack.c.bf16 %v150_v11, %v148_v10  ;;  %v152_v16 = vld [vmem:[#allocation9 + $0x40] sm:$0xff] }
  0x4e   :  { %1333 = vmatpush1.bf16.msra.mxu0 %v1332_v8  ;;  %1365 = vmatpush1.bf16.msra.mxu1 %v1332_v8  ;;  %v1338_v15 = vpack.c.bf16 %v155_v13, %v153_v12  ;;  %v154_v17 = vld [vmem:[#allocation9 + $0x50] sm:$0xff]  ;;  %v157_v18 = vld [vmem:[#allocation9 + $0x68] sm:$0xff]  ;;  %v159_v19 = vld [vmem:[#allocation9 + $0x78] sm:$0xff] }
  0x4f   :  { %1335 = vmatprep.subr.bf16.mxu0 %v1334_v9  ;;  %1367 = vmatprep.subr.bf16.mxu1 %v1334_v9  ;;  %v1340_v20 = vpack.c.bf16 %v154_v17, %v152_v16  ;;  %v1342_v21 = vpack.c.bf16 %v159_v19, %v157_v18  ;;  %v156_v22 = vld [vmem:[#allocation9 + $0x60] sm:$0xff]  ;;  %v158_v23 = vld [vmem:[#allocation9 + $0x70] sm:$0xff]  ;;  %v161_v24 = vld [vmem:[#allocation9 + $0x88] sm:$0xff] }
  0x50   :  { %v163_v25 = vld [vmem:[#allocation9 + $0x98] sm:$0xff]  ;;  %v1344_v26 = vpack.c.bf16 %v158_v23, %v156_v22  ;;  %v160_v28 = vld [vmem:[#allocation9 + $0x80] sm:$0xff]  ;;  %v162_v29 = vld [vmem:[#allocation9 + $0x90] sm:$0xff] }
  0x51   :  { %v1346_v27 = vpack.c.bf16 %v163_v25, %v161_v24  ;;  %v165_v30 = vld [vmem:[#allocation9 + $0xa8] sm:$0xff]  ;;  %v167_v31 = vld [vmem:[#allocation9 + $0xb8] sm:$0xff]  ;;  %v1348_v32 = vpack.c.bf16 %v162_v29, %v160_v28  ;;  %v164_v34 = vld [vmem:[#allocation9 + $0xa0] sm:$0xff] }
  0x52   :  { %1337 = vmatpush1.bf16.msra.mxu0 %v1336_v14  ;;  %1369 = vmatpush1.bf16.msra.mxu1 %v1336_v14  ;;  %v1350_v33 = vpack.c.bf16 %v167_v31, %v165_v30  ;;  %v166_v35 = vld [vmem:[#allocation9 + $0xb0] sm:$0xff]  ;;  %v169_v36 = vld [vmem:[#allocation9 + $0xc8] sm:$0xff]  ;;  %v171_v37 = vld [vmem:[#allocation9 + $0xd8] sm:$0xff] }
  0x53   :  { %1339 = vmatprep.subr.bf16.mxu0 %v1338_v15  ;;  %1371 = vmatprep.subr.bf16.mxu1 %v1338_v15  ;;  %v1352_v38 = vpack.c.bf16 %v166_v35, %v164_v34  ;;  %v1354_v39 = vpack.c.bf16 %v171_v37, %v169_v36  ;;  %v168_v40 = vld [vmem:[#allocation9 + $0xc0] sm:$0xff]  ;;  %v170_v41 = vld [vmem:[#allocation9 + $0xd0] sm:$0xff]  ;;  %v173_v42 = vld [vmem:[#allocation9 + $0xe8] sm:$0xff] }
  0x54   :  { %v175_v43 = vld [vmem:[#allocation9 + $0xf8] sm:$0xff]  ;;  %v1356_v44 = vpack.c.bf16 %v170_v41, %v168_v40  ;;  %v172_v46 = vld [vmem:[#allocation9 + $0xe0] sm:$0xff]  ;;  %v174_v47 = vld [vmem:[#allocation9 + $0xf0] sm:$0xff] }
  0x55   :  { %v1358_v45 = vpack.c.bf16 %v175_v43, %v173_v42  ;;  %v741_v48 = vld [vmem:[#allocation10 + $0x80] sm:$0xff]  ;;  %v742_v49 = vld [vmem:[#allocation10 + $0x88] sm:$0xff]  ;;  %v1360_v50 = vpack.c.bf16 %v174_v47, %v172_v46  ;;  %v743_v54 = vld [vmem:[#allocation10 + $0x90] sm:$0xff] }
  0x56   :  { %1341 = vmatpush1.bf16.msra.mxu0 %v1340_v20  ;;  %1373 = vmatpush1.bf16.msra.mxu1 %v1340_v20  ;;  %v1394_v51 = vpack.c.bf16 %v742_v49, %v741_v48  ;;  %v725_v52 = vld [vmem:[#allocation10] sm:$0xff]  ;;  %v726_v53 = vld [vmem:[#allocation10 + $0x8] sm:$0xff]  ;;  %v744_v55 = vld [vmem:[#allocation10 + $0x98] sm:$0xff] }
  0x57   :  { %1343 = vmatprep.subr.bf16.mxu0 %v1342_v21  ;;  %1375 = vmatprep.subr.bf16.mxu1 %v1342_v21  ;;  %v208_v56 = vld [vmem:[#allocation4] sm:$0xff]  ;;  %v1396_v58 = vpack.c.bf16 %v726_v53, %v725_v52  ;;  %v1398_v59 = vpack.c.bf16 %v744_v55, %v743_v54  ;;  %v727_v60 = vld [vmem:[#allocation10 + $0x10] sm:$0xff]  ;;  %v728_v61 = vld [vmem:[#allocation10 + $0x18] sm:$0xff] }
  0x58   :  { %v481_v57 = vld [vmem:[#allocation7] sm:$0xff]  ;;  %v746_v63 = vld [vmem:[#allocation10 + $0xa8] sm:$0xff]  ;;  %v1400_v3 = vpack.c.bf16 %v728_v61, %v727_v60  ;;  %v747_v7 = vld [vmem:[#allocation10 + $0xb0] sm:$0xff] }
  0x59   :  { %v745_v62 = vld [vmem:[#allocation10 + $0xa0] sm:$0xff]  ;;  %v209_v1 = vld [vmem:[#allocation4 + $0x8] sm:$0xff]  ;;  %v748_v8 = vld [vmem:[#allocation10 + $0xb8] sm:$0xff] }
  0x5a   :  { %1345 = vmatpush1.bf16.msra.mxu0 %v1344_v26  ;;  %1377 = vmatpush1.bf16.msra.mxu1 %v1344_v26  ;;  %v482_v2 = vld [vmem:[#allocation7 + $0x8] sm:$0xff]  ;;  %v1402_v4 = vpack.c.bf16 %v746_v63, %v745_v62  ;;  %v729_v5 = vld [vmem:[#allocation10 + $0x20] sm:$0xff]  ;;  %v210_v9 = vld [vmem:[#allocation4 + $0x10] sm:$0xff]  ;;  %v1406_v12 = vpack.c.bf16 %v748_v8, %v747_v7 }
  0x5b   :  { %1347 = vmatprep.subr.bf16.mxu0 %v1346_v27  ;;  %1379 = vmatprep.subr.bf16.mxu1 %v1346_v27  ;;  %v730_v6 = vld [vmem:[#allocation10 + $0x28] sm:$0xff]  ;;  %v483_v10 = vld [vmem:[#allocation7 + $0x10] sm:$0xff]  ;;  %v732_v14 = vld [vmem:[#allocation10 + $0x38] sm:$0xff] }
  0x5c   :  { %v1404_v11 = vpack.c.bf16 %v730_v6, %v729_v5  ;;  %v731_v13 = vld [vmem:[#allocation10 + $0x30] sm:$0xff]  ;;  %v749_v15 = vld [vmem:[#allocation10 + $0xc0] sm:$0xff]  ;;  %v750_v16 = vld [vmem:[#allocation10 + $0xc8] sm:$0xff] }
  0x5d   :  { %v211_v17 = vld [vmem:[#allocation4 + $0x18] sm:$0xff]  ;;  %v1408_v19 = vpack.c.bf16 %v732_v14, %v731_v13  ;;  %v1410_v20 = vpack.c.bf16 %v750_v16, %v749_v15  ;;  %v733_v21 = vld [vmem:[#allocation10 + $0x40] sm:$0xff]  ;;  %v734_v22 = vld [vmem:[#allocation10 + $0x48] sm:$0xff] }
  0x5e   :  { %1349 = vmatpush1.bf16.msra.mxu0 %v1348_v32  ;;  %1381 = vmatpush1.bf16.msra.mxu1 %v1348_v32  ;;  %v484_v18 = vld [vmem:[#allocation7 + $0x18] sm:$0xff]  ;;  %v751_v23 = vld [vmem:[#allocation10 + $0xd0] sm:$0xff]  ;;  %v212_v25 = vld [vmem:[#allocation4 + $0x20] sm:$0xff]  ;;  %v1412_v27 = vpack.c.bf16 %v734_v22, %v733_v21 }
  0x5f   :  { %1351 = vmatprep.subr.bf16.mxu0 %v1350_v33  ;;  %1383 = vmatprep.subr.bf16.mxu1 %v1350_v33  ;;  %v752_v24 = vld [vmem:[#allocation10 + $0xd8] sm:$0xff]  ;;  %v485_v26 = vld [vmem:[#allocation7 + $0x20] sm:$0xff]  ;;  %v735_v29 = vld [vmem:[#allocation10 + $0x50] sm:$0xff] }
  0x60   :  { %v1414_v28 = vpack.c.bf16 %v752_v24, %v751_v23  ;;  %v736_v30 = vld [vmem:[#allocation10 + $0x58] sm:$0xff]  ;;  %v753_v31 = vld [vmem:[#allocation10 + $0xe0] sm:$0xff]  ;;  %v754_v32 = vld [vmem:[#allocation10 + $0xe8] sm:$0xff] }
  0x61   :  { %v213_v33 = vld [vmem:[#allocation4 + $0x28] sm:$0xff]  ;;  %v1416_v35 = vpack.c.bf16 %v736_v30, %v735_v29  ;;  %v1418_v36 = vpack.c.bf16 %v754_v32, %v753_v31  ;;  %v737_v37 = vld [vmem:[#allocation10 + $0x60] sm:$0xff]  ;;  %v756_v40 = vld [vmem:[#allocation10 + $0xf8] sm:$0xff] }
  0x62   :  { %1353 = vmatpush1.bf16.msra.mxu0 %v1352_v38  ;;  %1385 = vmatpush1.bf16.msra.mxu1 %v1352_v38  ;;  %v486_v34 = vld [vmem:[#allocation7 + $0x28] sm:$0xff]  ;;  %v214_v41 = vld [vmem:[#allocation4 + $0x30] sm:$0xff]  ;;  %v740_v46 = vld [vmem:[#allocation10 + $0x78] sm:$0xff] }
  0x63   :  { %1355 = vmatprep.subr.bf16.mxu0 %v1354_v39  ;;  %1387 = vmatprep.subr.bf16.mxu1 %v1354_v39  ;;  %v738_v38 = vld [vmem:[#allocation10 + $0x68] sm:$0xff]  ;;  %v755_v39 = vld [vmem:[#allocation10 + $0xf0] sm:$0xff]  ;;  %v215_v47 = vld [vmem:[#allocation4 + $0x38] sm:$0xff] }
  0x64   :  { %v487_v42 = vld [vmem:[#allocation7 + $0x30] sm:$0xff]  ;;  %v1420_v43 = vpack.c.bf16 %v738_v38, %v737_v37  ;;  %v488_v48 = vld [vmem:[#allocation7 + $0x38] sm:$0xff]  ;;  %v217_v52 = vld [vmem:[#allocation4 + $0x48] sm:$0xff] }
  0x65   :  { %v490_v53 = vld [vmem:[#allocation7 + $0x48] sm:$0xff]  ;;  %v218_v54 = vld [vmem:[#allocation4 + $0x50] sm:$0xff] }
  0x66   :  { %1357 = vmatpush1.bf16.msra.mxu0 %v1356_v44  ;;  %1389 = vmatpush1.bf16.msra.mxu1 %v1356_v44  ;;  %v1422_v44 = vpack.c.bf16 %v756_v40, %v755_v39  ;;  %v491_v55 = vld [vmem:[#allocation7 + $0x50] sm:$0xff]  ;;  %v221_v60 = vld [vmem:[#allocation4 + $0x68] sm:$0xff] }
  0x67   :  { %1359 = vmatprep.subr.bf16.mxu0 %v1358_v45  ;;  %1391 = vmatprep.subr.bf16.mxu1 %v1358_v45  ;;  %v739_v45 = vld [vmem:[#allocation10 + $0x70] sm:$0xff]  ;;  %v494_v61 = vld [vmem:[#allocation7 + $0x68] sm:$0xff] }
  0x68   :  { %v1424_v49 = vpack.c.bf16 %v740_v46, %v739_v45  ;;  %v222_v62 = vld [vmem:[#allocation4 + $0x70] sm:$0xff] }
  0x69   :  { %v495_v63 = vld [vmem:[#allocation7 + $0x70] sm:$0xff] }
  0x6a   :  { %1361 = vmatpush1.bf16.msra.mxu0 %v1360_v50  ;;  %1393 = vmatpush1.bf16.msra.mxu1 %v1360_v50  ;;  %v216_v50 = vld [vmem:[#allocation4 + $0x40] sm:$0xff] }
  0x6b   :  { %1395 = vmatprep.subr.bf16.mxu0 %v1394_v51  ;;  %1427 = vmatprep.subr.bf16.mxu1 %v1394_v51  ;;  %v489_v51 = vld [vmem:[#allocation7 + $0x40] sm:$0xff] }
  0x6d   :  { %289 = vmatmul.mubr.f32.vlgmr.msra.gmra.mrb[0].mxu0 %v208_v56  ;;  %562 = vmatmul.mubr.f32.vlgmr.msra.gmra.mrb[0].mxu1 %v481_v57  ;;  %v219_v56 = vld [vmem:[#allocation4 + $0x58] sm:$0xff] }
  0x6e   :  { %294 = vmatprep.mubr.f32.mxu0 %v1594_v0  ;;  %567 = vmatprep.mubr.f32.mxu1 %v1594_v0  ;;  %v492_v57 = vld [vmem:[#allocation7 + $0x58] sm:$0xff] }
  0x6f   :  { %1397 = vmatpush3.bf16.msra.mxu0 %v1396_v58  ;;  %1429 = vmatpush3.bf16.msra.mxu1 %v1396_v58  ;;  %v220_v58 = vld [vmem:[#allocation4 + $0x60] sm:$0xff] }
  0x70   :  { %1399 = vmatprep.subr.bf16.mxu0 %v1398_v59  ;;  %1431 = vmatprep.subr.bf16.mxu1 %v1398_v59  ;;  %v493_v59 = vld [vmem:[#allocation7 + $0x60] sm:$0xff] }
  0x71   :  { %295 = vmatmul.mubr.f32.gmra.mrb[2].mxu0 %v209_v1  ;;  %568 = vmatmul.mubr.f32.gmra.mrb[2].mxu1 %v482_v2  ;;  %v223_v1 = vld [vmem:[#allocation4 + $0x78] sm:$0xff] }
  0x72   :  { %300 = vmatprep.mubr.f32.mxu0 %v1594_v0  ;;  %573 = vmatprep.mubr.f32.mxu1 %v1594_v0  ;;  %v496_v2 = vld [vmem:[#allocation7 + $0x78] sm:$0xff] }
  0x73   :  { %1401 = vmatpush3.bf16.msra.mxu0 %v1400_v3  ;;  %1433 = vmatpush3.bf16.msra.mxu1 %v1400_v3 }
  0x74   :  { %1403 = vmatprep.subr.bf16.mxu0 %v1402_v4  ;;  %1435 = vmatprep.subr.bf16.mxu1 %v1402_v4 }
  0x75   :  { %301 = vmatmul.mubr.f32.gmra.mrb[4].mxu0 %v210_v9  ;;  %574 = vmatmul.mubr.f32.gmra.mrb[4].mxu1 %v483_v10 }
  0x76   :  { %306 = vmatprep.mubr.f32.mxu0 %v1594_v0  ;;  %579 = vmatprep.mubr.f32.mxu1 %v1594_v0 }
  0x77   :  { %1405 = vmatpush3.bf16.msra.mxu0 %v1404_v11  ;;  %1437 = vmatpush3.bf16.msra.mxu1 %v1404_v11 }
  0x78   :  { %1407 = vmatprep.subr.bf16.mxu0 %v1406_v12  ;;  %1439 = vmatprep.subr.bf16.mxu1 %v1406_v12 }
  0x79   :  { %307 = vmatmul.mubr.f32.gmra.mrb[6].mxu0 %v211_v17  ;;  %580 = vmatmul.mubr.f32.gmra.mrb[6].mxu1 %v484_v18 }
  0x7a   :  { %312 = vmatprep.mubr.f32.mxu0 %v1594_v0  ;;  %585 = vmatprep.mubr.f32.mxu1 %v1594_v0 }
  0x7b   :  { %1409 = vmatpush3.bf16.msra.mxu0 %v1408_v19  ;;  %1441 = vmatpush3.bf16.msra.mxu1 %v1408_v19 }
  0x7c   :  { %1411 = vmatprep.subr.bf16.mxu0 %v1410_v20  ;;  %1443 = vmatprep.subr.bf16.mxu1 %v1410_v20 }
  0x7d   :  { %313 = vmatmul.mubr.f32.gmra.mrb[8].mxu0 %v212_v25  ;;  %586 = vmatmul.mubr.f32.gmra.mrb[8].mxu1 %v485_v26 }
  0x7e   :  { %318 = vmatprep.mubr.f32.mxu0 %v1594_v0  ;;  %591 = vmatprep.mubr.f32.mxu1 %v1594_v0 }
  0x7f   :  { %1413 = vmatpush3.bf16.msra.mxu0 %v1412_v27  ;;  %1445 = vmatpush3.bf16.msra.mxu1 %v1412_v27 }
  0x80   :  { %1415 = vmatprep.subr.bf16.mxu0 %v1414_v28  ;;  %1447 = vmatprep.subr.bf16.mxu1 %v1414_v28 }
  0x81   :  { %319 = vmatmul.mubr.f32.gmra.mrb[10].mxu0 %v213_v33  ;;  %592 = vmatmul.mubr.f32.gmra.mrb[10].mxu1 %v486_v34 }
  0x82   :  { %324 = vmatprep.mubr.f32.mxu0 %v1594_v0  ;;  %597 = vmatprep.mubr.f32.mxu1 %v1594_v0 }
  0x83   :  { %1417 = vmatpush3.bf16.msra.mxu0 %v1416_v35  ;;  %1449 = vmatpush3.bf16.msra.mxu1 %v1416_v35 }
  0x84   :  { %1419 = vmatprep.subr.bf16.mxu0 %v1418_v36  ;;  %1451 = vmatprep.subr.bf16.mxu1 %v1418_v36 }
  0x85   :  { %325 = vmatmul.mubr.f32.gmra.mrb[12].mxu0 %v214_v41  ;;  %598 = vmatmul.mubr.f32.gmra.mrb[12].mxu1 %v487_v42 }
  0x86   :  { %330 = vmatprep.mubr.f32.mxu0 %v1594_v0  ;;  %603 = vmatprep.mubr.f32.mxu1 %v1594_v0 }
  0x87   :  { %1421 = vmatpush3.bf16.msra.mxu0 %v1420_v43  ;;  %1453 = vmatpush3.bf16.msra.mxu1 %v1420_v43 }
  0x88   :  { %1423 = vmatprep.subr.bf16.mxu0 %v1422_v44  ;;  %1455 = vmatprep.subr.bf16.mxu1 %v1422_v44 }
  0x89   :  { %331 = vmatmul.mubr.f32.gmra.mrb[14].mxu0 %v215_v47  ;;  %604 = vmatmul.mubr.f32.gmra.mrb[14].mxu1 %v488_v48 }
  0x8a   :  { %336 = vmatprep.mubr.f32.mxu0 %v1594_v0  ;;  %609 = vmatprep.mubr.f32.mxu1 %v1594_v0 }
  0x8b   :  { %1425 = vmatpush3.bf16.msra.mxu0 %v1424_v49  ;;  %1457 = vmatpush3.bf16.msra.mxu1 %v1424_v49 }
  0x8d   :  { %337 = vmatmul.mubr.f32.gmra.mrb[16].mxu0 %v216_v50  ;;  %610 = vmatmul.mubr.f32.gmra.mrb[16].mxu1 %v489_v51 }
  0x8e   :  { %342 = vmatprep.mubr.f32.mxu0 %v1594_v0  ;;  %615 = vmatprep.mubr.f32.mxu1 %v1594_v0 }
  0x91   :  { %343 = vmatmul.mubr.f32.gmra.mrb[18].mxu0 %v217_v52  ;;  %616 = vmatmul.mubr.f32.gmra.mrb[18].mxu1 %v490_v53 }
  0x92   :  { %348 = vmatprep.mubr.f32.mxu0 %v1594_v0  ;;  %621 = vmatprep.mubr.f32.mxu1 %v1594_v0 }
  0x95   :  { %349 = vmatmul.mubr.f32.gmra.mrb[20].mxu0 %v218_v54  ;;  %622 = vmatmul.mubr.f32.gmra.mrb[20].mxu1 %v491_v55 }
  0x96   :  { %354 = vmatprep.mubr.f32.mxu0 %v1594_v0  ;;  %627 = vmatprep.mubr.f32.mxu1 %v1594_v0 }
  0x99   :  { %355 = vmatmul.mubr.f32.gmra.mrb[22].mxu0 %v219_v56  ;;  %628 = vmatmul.mubr.f32.gmra.mrb[22].mxu1 %v492_v57 }
  0x9a   :  { %360 = vmatprep.mubr.f32.mxu0 %v1594_v0  ;;  %633 = vmatprep.mubr.f32.mxu1 %v1594_v0 }
  0x9d   :  { %361 = vmatmul.mubr.f32.gmra.mrb[24].mxu0 %v220_v58  ;;  %634 = vmatmul.mubr.f32.gmra.mrb[24].mxu1 %v493_v59 }
  0x9e   :  { %366 = vmatprep.mubr.f32.mxu0 %v1594_v0  ;;  %639 = vmatprep.mubr.f32.mxu1 %v1594_v0 }
  0xa1   :  { %367 = vmatmul.mubr.f32.gmra.mrb[26].mxu0 %v221_v60  ;;  %640 = vmatmul.mubr.f32.gmra.mrb[26].mxu1 %v494_v61 }
  0xa2   :  { %372 = vmatprep.mubr.f32.mxu0 %v1594_v0  ;;  %645 = vmatprep.mubr.f32.mxu1 %v1594_v0 }
  0xa5   :  { %373 = vmatmul.mubr.f32.gmra.mrb[28].mxu0 %v222_v62  ;;  %646 = vmatmul.mubr.f32.gmra.mrb[28].mxu1 %v495_v63 }
  0xa6   :  { %378 = vmatprep.mubr.f32.mxu0 %v1594_v0  ;;  %651 = vmatprep.mubr.f32.mxu1 %v1594_v0 }
  0xa9   :  { %379 = vmatmul.mubr.f32.gmra.mrb[30].mxu0 %v223_v1  ;;  %652 = vmatmul.mubr.f32.gmra.mrb[30].mxu1 %v496_v2 }
 0x140   :  { %v290_v3 = vpop.f32.mrb[0].mxu0  ;;  %v563_v4 = vpop.f32.mrb[0].mxu1 }
 0x141   :  { %v292_v5 = vpop.f32.mrb[1].mxu0  ;;  %v565_v6 = vpop.f32.mrb[1].mxu1  ;;  %860 = vmatprep.mubr.f32.mxu0 %v563_v4  ;;  %v1728_v4 = vld [vmem:[%s1781_s4] ss:$0 sm:$0xff]  ;;  %s1595_s4 = smov [#allocation12]  }
 0x142   :  { %861 = vmatmul.mubr.f32.vlgmr.msra.gmra.mrb[32].mxu0 %v290_v3  ;;  %1053 = vmatprep.mubr.f32.mxu1 %v565_v6  ;;  %s1155_s6 = sshll.u32 %s1595_s4, 4  ;;  %s1156_s6 = int_to_ptr.vmem [resolvable:$true] %s1155_s6 }
 0x143   :  { %1054 = vmatmul.mubr.f32.vlgmr.msra.gmra.mrb[32].mxu1 %v292_v5  ;;  %s1556_s18 = scalar_lea.vmem %s1156_s6, 4096  ;;  %p1561_p5 = scmp.lt.s32.totalorder %s1156_s6, %s1156_s6 }
 0x144   :  { %v296_v7 = vpop.f32.mrb[2].mxu0  ;;  %v569_v8 = vpop.f32.mrb[2].mxu1  ;;  %p1557_p4 = scmp.ne.s32.totalorder %s1156_s6, %s1556_s18  ;;  %p1562_p6 = scmp.lt.s32.totalorder %s1556_s18, %s1556_s18 }
 0x145   :  { %v298_v9 = vpop.f32.mrb[3].mxu0  ;;  %v571_v10 = vpop.f32.mrb[3].mxu1  ;;  %865 = vmatprep.mubr.f32.mxu0 %v569_v8 }
 0x146   :  { %866 = vmatmul.mubr.f32.gmra.mrb[34].mxu0 %v296_v7  ;;  %1058 = vmatprep.mubr.f32.mxu1 %v571_v10  ;;  %p1563_p7 = por %p1562_p6, %p1561_p5 }
 0x147   :  { %1059 = vmatmul.mubr.f32.gmra.mrb[34].mxu1 %v298_v9 }
 0x148   :  { %v302_v0 = vpop.f32.mrb[4].mxu0  ;;  %v575_v11 = vpop.f32.mrb[4].mxu1  ;;  %p1564_p8 = pnand %p1563_p7, %p1557_p4 }
 0x149   :  { %v304_v12 = vpop.f32.mrb[5].mxu0  ;;  %v577_v13 = vpop.f32.mrb[5].mxu1  ;;  %870 = vmatprep.mubr.f32.mxu0 %v575_v11 }
 0x14a   :  { %871 = vmatmul.mubr.f32.gmra.mrb[36].mxu0 %v302_v0  ;;  %1063 = vmatprep.mubr.f32.mxu1 %v577_v13 }
 0x14b   :  { %1064 = vmatmul.mubr.f32.gmra.mrb[36].mxu1 %v304_v12 }
 0x14c   :  { %v308_v14 = vpop.f32.mrb[6].mxu0  ;;  %v581_v15 = vpop.f32.mrb[6].mxu1 }
 0x14d   :  { %v310_v16 = vpop.f32.mrb[7].mxu0  ;;  %v583_v17 = vpop.f32.mrb[7].mxu1  ;;  %875 = vmatprep.mubr.f32.mxu0 %v581_v15 }
 0x14e   :  { %876 = vmatmul.mubr.f32.gmra.mrb[38].mxu0 %v308_v14  ;;  %1068 = vmatprep.mubr.f32.mxu1 %v583_v17 }
 0x14f   :  { %1069 = vmatmul.mubr.f32.gmra.mrb[38].mxu1 %v310_v16 }
 0x150   :  { %v314_v18 = vpop.f32.mrb[8].mxu0  ;;  %v587_v19 = vpop.f32.mrb[8].mxu1 }
 0x151   :  { %v316_v20 = vpop.f32.mrb[9].mxu0  ;;  %v589_v21 = vpop.f32.mrb[9].mxu1  ;;  %880 = vmatprep.mubr.f32.mxu0 %v587_v19 }
 0x152   :  { %881 = vmatmul.mubr.f32.gmra.mrb[40].mxu0 %v314_v18  ;;  %1073 = vmatprep.mubr.f32.mxu1 %v589_v21 }
 0x153   :  { %1074 = vmatmul.mubr.f32.gmra.mrb[40].mxu1 %v316_v20 }
 0x154   :  { %v320_v22 = vpop.f32.mrb[10].mxu0  ;;  %v593_v23 = vpop.f32.mrb[10].mxu1 }
 0x155   :  { %v322_v24 = vpop.f32.mrb[11].mxu0  ;;  %v595_v25 = vpop.f32.mrb[11].mxu1  ;;  %885 = vmatprep.mubr.f32.mxu0 %v593_v23 }
 0x156   :  { %886 = vmatmul.mubr.f32.gmra.mrb[42].mxu0 %v320_v22  ;;  %1078 = vmatprep.mubr.f32.mxu1 %v595_v25 }
 0x157   :  { %1079 = vmatmul.mubr.f32.gmra.mrb[42].mxu1 %v322_v24 }
 0x158   :  { %v326_v26 = vpop.f32.mrb[12].mxu0  ;;  %v599_v27 = vpop.f32.mrb[12].mxu1 }
 0x159   :  { %v328_v28 = vpop.f32.mrb[13].mxu0  ;;  %v601_v29 = vpop.f32.mrb[13].mxu1  ;;  %890 = vmatprep.mubr.f32.mxu0 %v599_v27 }
 0x15a   :  { %891 = vmatmul.mubr.f32.gmra.mrb[44].mxu0 %v326_v26  ;;  %1083 = vmatprep.mubr.f32.mxu1 %v601_v29 }
 0x15b   :  { %1084 = vmatmul.mubr.f32.gmra.mrb[44].mxu1 %v328_v28 }
 0x15c   :  { %v332_v30 = vpop.f32.mrb[14].mxu0  ;;  %v605_v31 = vpop.f32.mrb[14].mxu1 }
 0x15d   :  { %v334_v32 = vpop.f32.mrb[15].mxu0  ;;  %v607_v33 = vpop.f32.mrb[15].mxu1  ;;  %895 = vmatprep.mubr.f32.mxu0 %v605_v31 }
 0x15e   :  { %896 = vmatmul.mubr.f32.gmra.mrb[46].mxu0 %v332_v30  ;;  %1088 = vmatprep.mubr.f32.mxu1 %v607_v33 }
 0x15f   :  { %1089 = vmatmul.mubr.f32.gmra.mrb[46].mxu1 %v334_v32 }
 0x160   :  { %v338_v34 = vpop.f32.mrb[16].mxu0  ;;  %v611_v35 = vpop.f32.mrb[16].mxu1 }
 0x161   :  { %v340_v36 = vpop.f32.mrb[17].mxu0  ;;  %v613_v37 = vpop.f32.mrb[17].mxu1  ;;  %900 = vmatprep.mubr.f32.mxu0 %v611_v35 }
 0x162   :  { %901 = vmatmul.mubr.f32.gmra.mrb[48].mxu0 %v338_v34  ;;  %1093 = vmatprep.mubr.f32.mxu1 %v613_v37 }
 0x163   :  { %1094 = vmatmul.mubr.f32.gmra.mrb[48].mxu1 %v340_v36 }
 0x164   :  { %v344_v38 = vpop.f32.mrb[18].mxu0  ;;  %v617_v39 = vpop.f32.mrb[18].mxu1 }
 0x165   :  { %v346_v40 = vpop.f32.mrb[19].mxu0  ;;  %v619_v41 = vpop.f32.mrb[19].mxu1  ;;  %905 = vmatprep.mubr.f32.mxu0 %v617_v39 }
 0x166   :  { %906 = vmatmul.mubr.f32.gmra.mrb[50].mxu0 %v344_v38  ;;  %1098 = vmatprep.mubr.f32.mxu1 %v619_v41 }
 0x167   :  { %1099 = vmatmul.mubr.f32.gmra.mrb[50].mxu1 %v346_v40 }
 0x168   :  { %v350_v42 = vpop.f32.mrb[20].mxu0  ;;  %v623_v43 = vpop.f32.mrb[20].mxu1 }
 0x169   :  { %v352_v44 = vpop.f32.mrb[21].mxu0  ;;  %v625_v45 = vpop.f32.mrb[21].mxu1  ;;  %910 = vmatprep.mubr.f32.mxu0 %v623_v43 }
 0x16a   :  { %911 = vmatmul.mubr.f32.gmra.mrb[52].mxu0 %v350_v42  ;;  %1103 = vmatprep.mubr.f32.mxu1 %v625_v45 }
 0x16b   :  { %1104 = vmatmul.mubr.f32.gmra.mrb[52].mxu1 %v352_v44 }
 0x16c   :  { %v356_v46 = vpop.f32.mrb[22].mxu0  ;;  %v629_v47 = vpop.f32.mrb[22].mxu1 }
 0x16d   :  { %v358_v48 = vpop.f32.mrb[23].mxu0  ;;  %v631_v49 = vpop.f32.mrb[23].mxu1  ;;  %915 = vmatprep.mubr.f32.mxu0 %v629_v47 }
 0x16e   :  { %916 = vmatmul.mubr.f32.gmra.mrb[54].mxu0 %v356_v46  ;;  %1108 = vmatprep.mubr.f32.mxu1 %v631_v49 }
 0x16f   :  { %1109 = vmatmul.mubr.f32.gmra.mrb[54].mxu1 %v358_v48 }
 0x170   :  { %v362_v50 = vpop.f32.mrb[24].mxu0  ;;  %v635_v51 = vpop.f32.mrb[24].mxu1 }
 0x171   :  { %v364_v52 = vpop.f32.mrb[25].mxu0  ;;  %v637_v53 = vpop.f32.mrb[25].mxu1  ;;  %920 = vmatprep.mubr.f32.mxu0 %v635_v51 }
 0x172   :  { %921 = vmatmul.mubr.f32.gmra.mrb[56].mxu0 %v362_v50  ;;  %1113 = vmatprep.mubr.f32.mxu1 %v637_v53 }
 0x173   :  { %1114 = vmatmul.mubr.f32.gmra.mrb[56].mxu1 %v364_v52 }
 0x174   :  { %v368_v54 = vpop.f32.mrb[26].mxu0  ;;  %v641_v55 = vpop.f32.mrb[26].mxu1 }
 0x175   :  { %v370_v56 = vpop.f32.mrb[27].mxu0  ;;  %v643_v57 = vpop.f32.mrb[27].mxu1  ;;  %925 = vmatprep.mubr.f32.mxu0 %v641_v55 }
 0x176   :  { %926 = vmatmul.mubr.f32.gmra.mrb[58].mxu0 %v368_v54  ;;  %1118 = vmatprep.mubr.f32.mxu1 %v643_v57 }
 0x177   :  { %1119 = vmatmul.mubr.f32.gmra.mrb[58].mxu1 %v370_v56 }
 0x178   :  { %v374_v58 = vpop.f32.mrb[28].mxu0  ;;  %v647_v59 = vpop.f32.mrb[28].mxu1 }
 0x179   :  { %v376_v60 = vpop.f32.mrb[29].mxu0  ;;  %v649_v61 = vpop.f32.mrb[29].mxu1  ;;  %930 = vmatprep.mubr.f32.mxu0 %v647_v59 }
 0x17a   :  { %931 = vmatmul.mubr.f32.gmra.mrb[60].mxu0 %v374_v58  ;;  %1123 = vmatprep.mubr.f32.mxu1 %v649_v61 }
 0x17b   :  { %1124 = vmatmul.mubr.f32.gmra.mrb[60].mxu1 %v376_v60 }
 0x17c   :  { %v380_v62 = vpop.f32.mrb[30].mxu0  ;;  %v653_v63 = vpop.f32.mrb[30].mxu1 }
 0x17d   :  { %v382_v1 = vpop.f32.mrb[31].mxu0  ;;  %v655_v2 = vpop.f32.mrb[31].mxu1  ;;  %935 = vmatprep.mubr.f32.mxu0 %v653_v63 }
 0x17e   :  { %936 = vmatmul.mubr.f32.gmra.mrb[62].mxu0 %v380_v62  ;;  %1128 = vmatprep.mubr.f32.mxu1 %v655_v2 }
 0x17f   :  { %1129 = vmatmul.mubr.f32.gmra.mrb[62].mxu1 %v382_v1 }
 0x215   :  { %v1202_v3 = vpop.f32.mrb[32].mxu0 }
 0x216   :  { %v1203_v5 = vpop.f32.mrb[33].mxu0  ;;  %v1282_v6 = vpop.f32.mrb[32].mxu1 }
 0x217   :  { %v1204_v7 = vadd.f32 %v1203_v5, %v1202_v3  ;;  %v1283_v8 = vpop.f32.mrb[33].mxu1 }
 0x218   :  { %v1284_v9 = vadd.f32 %v1283_v8, %v1282_v6 }
 0x219   :  { %v863_v10 = vadd.f32 %v1204_v7, %v1728_v4  ;;  %v1205_v0 = vpop.f32.mrb[34].mxu0 }
 0x21a   :  { %v1056_v11 = vadd.f32 %v1284_v9, %v1728_v4  ;;  %v1206_v12 = vpop.f32.mrb[35].mxu0  ;;  %v1285_v13 = vpop.f32.mrb[34].mxu1 }
 0x21b   :  { %941 = vst [vmem:[#allocation12] sm:$0xff] %v863_v10  ;;  %v1207_v14 = vadd.f32 %v1206_v12, %v1205_v0  ;;  %v1286_v15 = vpop.f32.mrb[35].mxu1 }
 0x21c   :  { %1134 = vst [vmem:[#allocation12 + $0x8] sm:$0xff] %v1056_v11  ;;  %v1287_v16 = vadd.f32 %v1286_v15, %v1285_v13 }
 0x21d   :  { %v868_v17 = vadd.f32 %v1207_v14, %v1728_v4  ;;  %v1208_v18 = vpop.f32.mrb[36].mxu0 }
 0x21e   :  { %v1061_v19 = vadd.f32 %v1287_v16, %v1728_v4  ;;  %v1209_v20 = vpop.f32.mrb[37].mxu0  ;;  %v1288_v21 = vpop.f32.mrb[36].mxu1 }
 0x21f   :  { %942 = vst [vmem:[#allocation12 + $0x10] sm:$0xff] %v868_v17  ;;  %v1210_v22 = vadd.f32 %v1209_v20, %v1208_v18  ;;  %v1289_v23 = vpop.f32.mrb[37].mxu1 }
 0x220   :  { %1135 = vst [vmem:[#allocation12 + $0x18] sm:$0xff] %v1061_v19  ;;  %v1290_v24 = vadd.f32 %v1289_v23, %v1288_v21 }
 0x221   :  { %v873_v25 = vadd.f32 %v1210_v22, %v1728_v4  ;;  %v1211_v26 = vpop.f32.mrb[38].mxu0 }
 0x222   :  { %v1066_v27 = vadd.f32 %v1290_v24, %v1728_v4  ;;  %v1212_v28 = vpop.f32.mrb[39].mxu0  ;;  %v1291_v29 = vpop.f32.mrb[38].mxu1 }
 0x223   :  { %943 = vst [vmem:[#allocation12 + $0x20] sm:$0xff] %v873_v25  ;;  %v1213_v30 = vadd.f32 %v1212_v28, %v1211_v26  ;;  %v1292_v31 = vpop.f32.mrb[39].mxu1 }
 0x224   :  { %1136 = vst [vmem:[#allocation12 + $0x28] sm:$0xff] %v1066_v27  ;;  %v1293_v32 = vadd.f32 %v1292_v31, %v1291_v29 }
 0x225   :  { %v878_v33 = vadd.f32 %v1213_v30, %v1728_v4  ;;  %v1214_v34 = vpop.f32.mrb[40].mxu0 }
 0x226   :  { %v1071_v35 = vadd.f32 %v1293_v32, %v1728_v4  ;;  %v1215_v36 = vpop.f32.mrb[41].mxu0  ;;  %v1294_v37 = vpop.f32.mrb[40].mxu1 }
 0x227   :  { %944 = vst [vmem:[#allocation12 + $0x30] sm:$0xff] %v878_v33  ;;  %v1216_v38 = vadd.f32 %v1215_v36, %v1214_v34  ;;  %v1295_v39 = vpop.f32.mrb[41].mxu1 }
 0x228   :  { %1137 = vst [vmem:[#allocation12 + $0x38] sm:$0xff] %v1071_v35  ;;  %v1296_v40 = vadd.f32 %v1295_v39, %v1294_v37 }
 0x229   :  { %v883_v41 = vadd.f32 %v1216_v38, %v1728_v4  ;;  %v1217_v42 = vpop.f32.mrb[42].mxu0 }
 0x22a   :  { %v1076_v43 = vadd.f32 %v1296_v40, %v1728_v4  ;;  %v1218_v44 = vpop.f32.mrb[43].mxu0  ;;  %v1297_v45 = vpop.f32.mrb[42].mxu1 }
 0x22b   :  { %945 = vst [vmem:[#allocation12 + $0x40] sm:$0xff] %v883_v41  ;;  %v1219_v46 = vadd.f32 %v1218_v44, %v1217_v42  ;;  %v1298_v47 = vpop.f32.mrb[43].mxu1 }
 0x22c   :  { %1138 = vst [vmem:[#allocation12 + $0x48] sm:$0xff] %v1076_v43  ;;  %v1299_v48 = vadd.f32 %v1298_v47, %v1297_v45 }
 0x22d   :  { %v888_v49 = vadd.f32 %v1219_v46, %v1728_v4  ;;  %v1220_v50 = vpop.f32.mrb[44].mxu0 }
 0x22e   :  { %v1081_v51 = vadd.f32 %v1299_v48, %v1728_v4  ;;  %v1221_v52 = vpop.f32.mrb[45].mxu0  ;;  %v1300_v53 = vpop.f32.mrb[44].mxu1 }
 0x22f   :  { %946 = vst [vmem:[#allocation12 + $0x50] sm:$0xff] %v888_v49  ;;  %v1222_v54 = vadd.f32 %v1221_v52, %v1220_v50  ;;  %v1301_v55 = vpop.f32.mrb[45].mxu1 }
 0x230   :  { %1139 = vst [vmem:[#allocation12 + $0x58] sm:$0xff] %v1081_v51  ;;  %v1302_v56 = vadd.f32 %v1301_v55, %v1300_v53 }
 0x231   :  { %v893_v57 = vadd.f32 %v1222_v54, %v1728_v4  ;;  %v1223_v58 = vpop.f32.mrb[46].mxu0 }
 0x232   :  { %v1086_v59 = vadd.f32 %v1302_v56, %v1728_v4  ;;  %v1224_v60 = vpop.f32.mrb[47].mxu0  ;;  %v1303_v61 = vpop.f32.mrb[46].mxu1 }
 0x233   :  { %947 = vst [vmem:[#allocation12 + $0x60] sm:$0xff] %v893_v57  ;;  %v1225_v62 = vadd.f32 %v1224_v60, %v1223_v58  ;;  %v1304_v63 = vpop.f32.mrb[47].mxu1 }
 0x234   :  { %1140 = vst [vmem:[#allocation12 + $0x68] sm:$0xff] %v1086_v59  ;;  %v1305_v1 = vadd.f32 %v1304_v63, %v1303_v61 }
 0x235   :  { %v898_v2 = vadd.f32 %v1225_v62, %v1728_v4  ;;  %v1226_v3 = vpop.f32.mrb[48].mxu0 }
 0x236   :  { %v1091_v5 = vadd.f32 %v1305_v1, %v1728_v4  ;;  %v1227_v6 = vpop.f32.mrb[49].mxu0  ;;  %v1306_v7 = vpop.f32.mrb[48].mxu1 }
 0x237   :  { %948 = vst [vmem:[#allocation12 + $0x70] sm:$0xff] %v898_v2  ;;  %v1228_v8 = vadd.f32 %v1227_v6, %v1226_v3  ;;  %v1307_v9 = vpop.f32.mrb[49].mxu1 }
 0x238   :  { %1141 = vst [vmem:[#allocation12 + $0x78] sm:$0xff] %v1091_v5  ;;  %v1308_v10 = vadd.f32 %v1307_v9, %v1306_v7 }
 0x239   :  { %v903_v0 = vadd.f32 %v1228_v8, %v1728_v4  ;;  %v1229_v11 = vpop.f32.mrb[50].mxu0 }
 0x23a   :  { %v1096_v12 = vadd.f32 %v1308_v10, %v1728_v4  ;;  %v1230_v13 = vpop.f32.mrb[51].mxu0  ;;  %v1309_v14 = vpop.f32.mrb[50].mxu1 }
 0x23b   :  { %949 = vst [vmem:[#allocation12 + $0x80] sm:$0xff] %v903_v0  ;;  %v1231_v15 = vadd.f32 %v1230_v13, %v1229_v11  ;;  %v1310_v16 = vpop.f32.mrb[51].mxu1 }
 0x23c   :  { %1142 = vst [vmem:[#allocation12 + $0x88] sm:$0xff] %v1096_v12  ;;  %v1311_v17 = vadd.f32 %v1310_v16, %v1309_v14 }
 0x23d   :  { %v908_v18 = vadd.f32 %v1231_v15, %v1728_v4  ;;  %v1232_v19 = vpop.f32.mrb[52].mxu0 }
 0x23e   :  { %v1101_v20 = vadd.f32 %v1311_v17, %v1728_v4  ;;  %v1233_v21 = vpop.f32.mrb[53].mxu0  ;;  %v1312_v22 = vpop.f32.mrb[52].mxu1 }
 0x23f   :  { %950 = vst [vmem:[#allocation12 + $0x90] sm:$0xff] %v908_v18  ;;  %v1234_v23 = vadd.f32 %v1233_v21, %v1232_v19  ;;  %v1313_v24 = vpop.f32.mrb[53].mxu1 }
 0x240   :  { %1143 = vst [vmem:[#allocation12 + $0x98] sm:$0xff] %v1101_v20  ;;  %v1314_v25 = vadd.f32 %v1313_v24, %v1312_v22 }
 0x241   :  { %v913_v26 = vadd.f32 %v1234_v23, %v1728_v4  ;;  %v1235_v27 = vpop.f32.mrb[54].mxu0 }
 0x242   :  { %v1106_v28 = vadd.f32 %v1314_v25, %v1728_v4  ;;  %v1236_v29 = vpop.f32.mrb[55].mxu0  ;;  %v1315_v30 = vpop.f32.mrb[54].mxu1 }
 0x243   :  { %951 = vst [vmem:[#allocation12 + $0xa0] sm:$0xff] %v913_v26  ;;  %v1237_v31 = vadd.f32 %v1236_v29, %v1235_v27  ;;  %v1316_v32 = vpop.f32.mrb[55].mxu1 }
 0x244   :  { %1144 = vst [vmem:[#allocation12 + $0xa8] sm:$0xff] %v1106_v28  ;;  %v1317_v33 = vadd.f32 %v1316_v32, %v1315_v30 }
 0x245   :  { %v918_v34 = vadd.f32 %v1237_v31, %v1728_v4  ;;  %v1238_v35 = vpop.f32.mrb[56].mxu0 }
 0x246   :  { %v1111_v36 = vadd.f32 %v1317_v33, %v1728_v4  ;;  %v1239_v37 = vpop.f32.mrb[57].mxu0  ;;  %v1318_v38 = vpop.f32.mrb[56].mxu1 }
 0x247   :  { %952 = vst [vmem:[#allocation12 + $0xb0] sm:$0xff] %v918_v34  ;;  %v1240_v39 = vadd.f32 %v1239_v37, %v1238_v35  ;;  %v1319_v40 = vpop.f32.mrb[57].mxu1 }
 0x248   :  { %1145 = vst [vmem:[#allocation12 + $0xb8] sm:$0xff] %v1111_v36  ;;  %v1320_v41 = vadd.f32 %v1319_v40, %v1318_v38 }
 0x249   :  { %v923_v42 = vadd.f32 %v1240_v39, %v1728_v4  ;;  %v1241_v43 = vpop.f32.mrb[58].mxu0 }
 0x24a   :  { %v1116_v44 = vadd.f32 %v1320_v41, %v1728_v4  ;;  %v1242_v45 = vpop.f32.mrb[59].mxu0  ;;  %v1321_v46 = vpop.f32.mrb[58].mxu1 }
 0x24b   :  { %953 = vst [vmem:[#allocation12 + $0xc0] sm:$0xff] %v923_v42  ;;  %v1243_v47 = vadd.f32 %v1242_v45, %v1241_v43  ;;  %v1322_v48 = vpop.f32.mrb[59].mxu1 }
 0x24c   :  { %1146 = vst [vmem:[#allocation12 + $0xc8] sm:$0xff] %v1116_v44  ;;  %v1323_v49 = vadd.f32 %v1322_v48, %v1321_v46 }
 0x24d   :  { %v928_v50 = vadd.f32 %v1243_v47, %v1728_v4  ;;  %v1244_v51 = vpop.f32.mrb[60].mxu0 }
 0x24e   :  { %v1121_v52 = vadd.f32 %v1323_v49, %v1728_v4  ;;  %v1245_v53 = vpop.f32.mrb[61].mxu0  ;;  %v1324_v54 = vpop.f32.mrb[60].mxu1 }
 0x24f   :  { %954 = vst [vmem:[#allocation12 + $0xd0] sm:$0xff] %v928_v50  ;;  %v1246_v55 = vadd.f32 %v1245_v53, %v1244_v51  ;;  %v1325_v56 = vpop.f32.mrb[61].mxu1 }
 0x250   :  { %1147 = vst [vmem:[#allocation12 + $0xd8] sm:$0xff] %v1121_v52  ;;  %v1326_v57 = vadd.f32 %v1325_v56, %v1324_v54 }
 0x251   :  { %v933_v58 = vadd.f32 %v1246_v55, %v1728_v4  ;;  %v1247_v59 = vpop.f32.mrb[62].mxu0 }
 0x252   :  { %v1126_v60 = vadd.f32 %v1326_v57, %v1728_v4  ;;  %v1248_v61 = vpop.f32.mrb[63].mxu0  ;;  %v1327_v62 = vpop.f32.mrb[62].mxu1 }
 0x253   :  { %955 = vst [vmem:[#allocation12 + $0xe0] sm:$0xff] %v933_v58  ;;  %v1249_v63 = vadd.f32 %v1248_v61, %v1247_v59  ;;  %v1328_v1 = vpop.f32.mrb[63].mxu1 }
 0x254   :  { %1148 = vst [vmem:[#allocation12 + $0xe8] sm:$0xff] %v1126_v60  ;;  %v1329_v2 = vadd.f32 %v1328_v1, %v1327_v62 }
 0x255   :  { %v938_v3 = vadd.f32 %v1249_v63, %v1728_v4 }
 0x256   :  { %v1131_v5 = vadd.f32 %v1329_v2, %v1728_v4 }
 0x257   :  { %956 = vst [vmem:[#allocation12 + $0xf0] sm:$0xff] %v938_v3 }
 0x258   :  { %1149 = vst [vmem:[#allocation12 + $0xf8] sm:$0xff] %v1131_v5 }
 0x259   :  { %1567 = shalt.err (!%p1564_p8)
}
 0x25a   :  { %s1568_s22 = scalar_lea.hbm %s1782_s5, 4096 }
 0x25b   :  { %p1569_p9 = scmp.ne.s32.totalorder %s1782_s5, %s1568_s22  ;;  %p1572_p10 = scmp.lt.u32.totalorder %s1568_s22, %s1782_s5 }
 0x25d   :  { %p1574_p11 = pnand %p1572_p10, %p1569_p9 }
 0x25f   :  { %1577 = shalt.err (!%p1574_p11)
}
 0x260   :  { %1161 = dma.vmem_to_hbm [thread:$0]  %s1156_s6, 4096, %s1782_s5, [#allocation6], %s1591_s0, %s1591_s0, %s1592_s21  }
 0x261   :  { %1584 = dma.done.wait [#allocation6], 4096  }
 0x262   :  { %1585 = vsyncadd [#allocation6], 4294963200 }
 0x263   :  { %1165 = vsyncpa [#allocation5], 1 }
 0x264   :  { %1166 = vsyncpa [#allocation8], 1 }
 0x265   :  { %1167 = vsyncpa [#allocation11], 1 }
 0x266   :  { %1168 = vsyncpa [#allocation6], 1 }

</bundles_post_ra>
